<compile_context>
chip_gen: v7x
topology: tpu7x:2x2x1
jax: 0.10.0
libtpu: 0.0.40
codegen_flags: <defaults>
</compile_context>

<pallas_src>
from functools import partial

import jax
import jax.numpy as jnp
from jax import lax
from jax.experimental import pallas as pl
from jax.experimental.pallas import tpu as pltpu

_NEG = -1e30  # drives softmax padding lanes to exp(.) == 0


def _round8(n):
    return ((n + 7) // 8) * 8


def _slab_layout(S, H):
    """Row offsets for the packed parameter slab (8-row aligned sections)."""
    offs = {}
    r = 0
    for name, rows in (("w1t", S), ("b1", 1), ("wiht", H), ("whht", H),
                       ("bihh", 1), ("w2t", H), ("b2", 1)):
        offs[name] = r
        r += _round8(rows)
    return offs, r


def pack_params(params):
    """Pack all weights/biases into ONE (rows, 128) f32 slab.

    Called ONCE (outside the per-call path). Encodes two pack-time tricks:
      * sigmoid-gate (i, f, o) columns of W_ih^T / W_hh^T / (b_ih+b_hh) are
        pre-scaled by 0.5 so the kernel can use a single tanh for all gates
        (sigmoid(z) == 0.5*(1 + tanh(z/2))); cell-gate columns stay unscaled.
      * the b2 row is padded with -1e30 in lanes [A:128] so the kernel can run
        a full-128-lane softmax and store the probs with one unmasked vst.
    """
    S = params["w1"].shape[1]
    H = params["w1"].shape[0]
    A = params["w2"].shape[0]
    offs, rows = _slab_layout(S, H)

    # PyTorch gate order: i, f, g(cell), o  ->  halve i/f/o columns.
    gate_scale = jnp.concatenate(
        [jnp.full((2 * H,), 0.5, jnp.float32),
         jnp.ones((H,), jnp.float32),
         jnp.full((H,), 0.5, jnp.float32)])

    slab = jnp.zeros((rows, 128), jnp.float32)
    slab = slab.at[offs["w1t"]:offs["w1t"] + S, 0:H].set(params["w1"].T)
    slab = slab.at[offs["b1"], 0:H].set(params["b1"])
    slab = slab.at[offs["wiht"]:offs["wiht"] + H, 0:4 * H].set(
        params["w_ih"].T * gate_scale)
    slab = slab.at[offs["whht"]:offs["whht"] + H, 0:4 * H].set(
        params["w_hh"].T * gate_scale)
    slab = slab.at[offs["bihh"], 0:4 * H].set(
        (params["b_ih"] + params["b_hh"]) * gate_scale)
    slab = slab.at[offs["w2t"]:offs["w2t"] + H, 0:A].set(params["w2"].T)
    slab = slab.at[offs["b2"], :].set(jnp.full((128,), _NEG, jnp.float32))
    slab = slab.at[offs["b2"], 0:A].set(params["b2"])
    return slab


def _policy_kernel(x_ref, hc_ref, slab_ref, out_ref):
    TB, S = x_ref.shape            # x flattened to (T*B, S) by the wrapper
    twoB, H = hc_ref.shape         # hc = concat([h0, c0]) -> (2B, H)
    B = twoB // 2
    T = TB // B
    offs, _ = _slab_layout(S, H)

    # --- one-time parameter loads from the packed slab (static slices) ---
    w1t = slab_ref[offs["w1t"]:offs["w1t"] + S, 0:H]            # (S, H)
    b1 = slab_ref[offs["b1"]:offs["b1"] + 1, 0:H]               # (1, H)
    wiht = slab_ref[offs["wiht"]:offs["wiht"] + H, 0:4 * H]     # (H, 4H)  i/f/o halved
    whht = slab_ref[offs["whht"]:offs["whht"] + H, 0:4 * H]     # (H, 4H)  i/f/o halved
    bihh = slab_ref[offs["bihh"]:offs["bihh"] + 1, 0:4 * H]     # (1, 4H)  i/f/o halved
    w2t = slab_ref[offs["w2t"]:offs["w2t"] + H, :]              # (H, 128), lanes A:128 zero
    b2 = slab_ref[offs["b2"]:offs["b2"] + 1, :]                 # (1, 128), lanes A:128 = -1e30

    # --- hoisted, batched non-recurrent work: all T timesteps in 2 matmuls ---
    z = jnp.maximum(
        jnp.dot(x_ref[...], w1t, preferred_element_type=jnp.float32) + b1, 0.0)
    pre = jnp.dot(z, wiht, preferred_element_type=jnp.float32) + bihh    # (T*B, 4H)

    h = hc_ref[0:B, :]                                          # (B, H)
    c = hc_ref[B:2 * B, :]                                      # (B, H)

    # --- serial recurrence, fully unrolled (T is static & small) ---
    # Per step: one tiny MXU dot + ONE tanh covering all 4 gate blocks
    # (sigmoid(z) = 0.5*(1 + tanh(z/2)); the /2 is baked into the slab) + tanh(c).
    hs = []
    for t in range(T):
        g = pre[t * B:(t + 1) * B, :] + jnp.dot(
            h, whht, preferred_element_type=jnp.float32)        # (B, 4H)
        tg = jnp.tanh(g)                                        # single EUP push for all gates
        i_g = 0.5 * (tg[:, 0:H] + 1.0)
        f_g = 0.5 * (tg[:, H:2 * H] + 1.0)
        g_g = tg[:, 2 * H:3 * H]
        o_g = 0.5 * (tg[:, 3 * H:4 * H] + 1.0)
        c = f_g * c + i_g * g_g
        h = o_g * jnp.tanh(c)
        hs.append(h)                                            # register-resident

    hs_all = jnp.concatenate(hs, axis=0)                        # (T*B, H), no VMEM round-trip

    # --- hoisted linear2 + softmax over all timesteps, full 128-lane store ---
    # Padded lanes have logits == -1e30 -> exp == 0 -> they neither perturb the
    # normalization nor require a masked store.
    logits = jnp.dot(hs_all, w2t, preferred_element_type=jnp.float32) + b2   # (T*B, 128)
    m = jnp.max(logits, axis=-1, keepdims=True)
    e = jnp.exp(logits - m)
    denom = jnp.sum(e, axis=-1, keepdims=True)
    out_ref[0:TB, :] = e / denom                                # unmasked lane-dense vst

    # Final recurrent state packed into the tail rows of the same output slab.
    r_hc = _round8(TB)
    out_ref[r_hc:r_hc + 2 * B, 0:H] = jnp.concatenate([h, c], axis=0)


@partial(jax.jit, static_argnames=("action_space",))
def policy_forward(x, h, c, slab, *, action_space):
    """x: (T,B,S) f32; h,c: (1,B,H) f32; slab from pack_params().
    Returns (probs (T,B,A), h' (1,B,H), c' (1,B,H))."""
    T, B, S = x.shape
    H = h.shape[-1]
    TB = T * B

    x2 = x.reshape(TB, S)                                   # free, contiguous reshape
    hc0 = jnp.concatenate([h.reshape(B, H), c.reshape(B, H)], axis=0)   # one cheap concat

    r_hc = _round8(TB)
    rows_out = r_hc + _round8(2 * B)

    vmem = pl.BlockSpec(memory_space=pltpu.MemorySpace.VMEM)
    out_slab = pl.pallas_call(
        _policy_kernel,
        out_shape=jax.ShapeDtypeStruct((rows_out, 128), jnp.float32),
        in_specs=[vmem, vmem, vmem],
        out_specs=vmem,
    )(x2, hc0, slab)

    probs = out_slab[0:TB, 0:action_space].reshape(T, B, action_space)
    new_h = out_slab[r_hc:r_hc + B, 0:H].reshape(1, B, H)
    new_c = out_slab[r_hc + B:r_hc + 2 * B, 0:H].reshape(1, B, H)
    return probs, new_h, new_c


def init_params(key, state_space, hidden_space, action_space):
    """Deterministic init mirroring PyTorch default uniform(-1/sqrt(fan_in), ...)."""
    ks = jax.random.split(key, 8)
    H, S, A = hidden_space, state_space, action_space

    def u(k, shape, fan_in):
        bound = 1.0 / jnp.sqrt(jnp.float32(fan_in))
        return jax.random.uniform(k, shape, jnp.float32, -bound, bound)

    return {
        "w1": u(ks[0], (H, S), S),
        "b1": u(ks[1], (H,), S),
        "w_ih": u(ks[2], (4 * H, H), H),
        "w_hh": u(ks[3], (4 * H, H), H),
        "b_ih": u(ks[4], (4 * H,), H),
        "b_hh": u(ks[5], (4 * H,), H),
        "w2": u(ks[6], (A, H), H),
        "b2": u(ks[7], (A,), H),
    }


def policy_forward_ref(x, h, c, params):
    """Pure-JAX reference for verification (standard sigmoid/tanh formulation)."""
    H = h.shape[-1]
    z = jnp.maximum(jnp.einsum("tbs,hs->tbh", x, params["w1"]) + params["b1"], 0.0)

    def step(carry, zt):
        hh, cc = carry
        gates = (zt @ params["w_ih"].T + params["b_ih"] +
                 hh @ params["w_hh"].T + params["b_hh"])
        i_g = jax.nn.sigmoid(gates[:, 0:H])
        f_g = jax.nn.sigmoid(gates[:, H:2 * H])
        g_g = jnp.tanh(gates[:, 2 * H:3 * H])
        o_g = jax.nn.sigmoid(gates[:, 3 * H:4 * H])
        c_new = f_g * cc + i_g * g_g
        h_new = o_g * jnp.tanh(c_new)
        return (h_new, c_new), h_new

    (hN, cN), hs = lax.scan(step, (h[0], c[0]), z)
    logits = jnp.einsum("tbh,ah->tba", hs, params["w2"]) + params["b2"]
    probs = jax.nn.softmax(logits, axis=2)
    return probs, hN[None], cN[None]


if __name__ == "__main__":
    STATE, HIDDEN, ACTION = 2, 4, 2
    T, B = 8, 1

    key = jax.random.PRNGKey(0)
    k_params, k_x = jax.random.split(key)
    params = init_params(k_params, STATE, HIDDEN, ACTION)

    # Parameter slab built ONCE, outside the per-call forward path.
    slab = jax.block_until_ready(pack_params(params))

    x = jax.random.normal(k_x, (T, B, STATE), dtype=jnp.float32)
    h0 = jnp.zeros((1, B, HIDDEN), dtype=jnp.float32)
    c0 = jnp.zeros((1, B, HIDDEN), dtype=jnp.float32)

    probs, new_h, new_c = jax.block_until_ready(
        policy_forward(x, h0, c0, slab, action_space=ACTION))

    # Verify against pure-JAX reference.
    ref_probs, ref_h, ref_c = policy_forward_ref(x, h0, c0, params)
    assert probs.shape == (T, B, ACTION)
    assert new_h.shape == (1, B, HIDDEN) and new_c.shape == (1, B, HIDDEN)
    assert jnp.allclose(probs, ref_probs, atol=1e-5, rtol=1e-5)
    assert jnp.allclose(new_h, ref_h, atol=1e-5, rtol=1e-5)
    assert jnp.allclose(new_c, ref_c, atol=1e-5, rtol=1e-5)

    print("KERNEL_OK")
</pallas_src>

<mosaic_0001>
module attributes {stable_mosaic.version = 11 : i64} {
  func.func @_policy_kernel(%arg0: memref<8x2xf32, #tpu.memory_space<vmem>>, %arg1: memref<2x4xf32, #tpu.memory_space<vmem>>, %arg2: memref<56x128xf32, #tpu.memory_space<vmem>>, %arg3: memref<16x128xf32, #tpu.memory_space<vmem>>) attributes {dimension_semantics = [], scalar_prefetch = 0 : i64, scratch_operands = 0 : i64, tpu.core_type = #tpu.core_type<tc>} {
    %c0 = arith.constant 0 : index
    %c0_0 = arith.constant 0 : index
    %0 = vector.load %arg2[%c0, %c0_0] : memref<56x128xf32, #tpu.memory_space<vmem>>, vector<2x4xf32>
    %c8 = arith.constant 8 : index
    %c0_1 = arith.constant 0 : index
    %1 = vector.load %arg2[%c8, %c0_1] : memref<56x128xf32, #tpu.memory_space<vmem>>, vector<1x4xf32>
    %c16 = arith.constant 16 : index
    %c0_2 = arith.constant 0 : index
    %2 = vector.load %arg2[%c16, %c0_2] : memref<56x128xf32, #tpu.memory_space<vmem>>, vector<4x16xf32>
    %c24 = arith.constant 24 : index
    %c0_3 = arith.constant 0 : index
    %3 = vector.load %arg2[%c24, %c0_3] : memref<56x128xf32, #tpu.memory_space<vmem>>, vector<4x16xf32>
    %c32 = arith.constant 32 : index
    %c0_4 = arith.constant 0 : index
    %4 = vector.load %arg2[%c32, %c0_4] : memref<56x128xf32, #tpu.memory_space<vmem>>, vector<1x16xf32>
    %c40 = arith.constant 40 : index
    %c0_5 = arith.constant 0 : index
    %5 = vector.load %arg2[%c40, %c0_5] : memref<56x128xf32, #tpu.memory_space<vmem>>, vector<4x128xf32>
    %c48 = arith.constant 48 : index
    %c0_6 = arith.constant 0 : index
    %6 = vector.load %arg2[%c48, %c0_6] : memref<56x128xf32, #tpu.memory_space<vmem>>, vector<1x128xf32>
    %c0_7 = arith.constant 0 : index
    %c0_8 = arith.constant 0 : index
    %7 = vector.load %arg0[%c0_7, %c0_8] : memref<8x2xf32, #tpu.memory_space<vmem>>, vector<8x2xf32>
    %cst = arith.constant dense<0.000000e+00> : vector<8x4xf32>
    %8 = tpu.matmul %7, %0, %cst {dimension_numbers = #tpu.dot_dimension_numbers<[1], [0], [0], [1], [0, 0, 1, 1], [], []>} : vector<8x2xf32>, vector<2x4xf32>, vector<8x4xf32> -> vector<8x4xf32>
    %9 = vector.broadcast %1 : vector<1x4xf32> to vector<8x4xf32>
    %10 = arith.addf %8, %9 : vector<8x4xf32>
    %cst_9 = arith.constant 0.000000e+00 : f32
    %11 = vector.broadcast %cst_9 : f32 to vector<8x4xf32>
    %12 = arith.maximumf %10, %11 : vector<8x4xf32>
    %cst_10 = arith.constant dense<0.000000e+00> : vector<8x16xf32>
    %13 = tpu.matmul %12, %2, %cst_10 {dimension_numbers = #tpu.dot_dimension_numbers<[1], [0], [0], [1], [0, 0, 1, 1], [], []>} : vector<8x4xf32>, vector<4x16xf32>, vector<8x16xf32> -> vector<8x16xf32>
    %14 = vector.broadcast %4 : vector<1x16xf32> to vector<8x16xf32>
    %15 = arith.addf %13, %14 : vector<8x16xf32>
    %c0_11 = arith.constant 0 : index
    %c0_12 = arith.constant 0 : index
    %16 = vector.load %arg1[%c0_11, %c0_12] : memref<2x4xf32, #tpu.memory_space<vmem>>, vector<1x4xf32>
    %c1 = arith.constant 1 : index
    %c0_13 = arith.constant 0 : index
    %17 = vector.load %arg1[%c1, %c0_13] : memref<2x4xf32, #tpu.memory_space<vmem>>, vector<1x4xf32>
    %18 = vector.extract_strided_slice %15 {offsets = [0, 0], sizes = [1, 16], strides = [1, 1]} : vector<8x16xf32> to vector<1x16xf32>
    %cst_14 = arith.constant dense<0.000000e+00> : vector<1x16xf32>
    %19 = tpu.matmul %16, %3, %cst_14 {dimension_numbers = #tpu.dot_dimension_numbers<[1], [0], [0], [1], [0, 0, 1, 1], [], []>} : vector<1x4xf32>, vector<4x16xf32>, vector<1x16xf32> -> vector<1x16xf32>
    %20 = arith.addf %18, %19 : vector<1x16xf32>
    %21 = math.tanh %20 : vector<1x16xf32>
    %22 = vector.extract_strided_slice %21 {offsets = [0, 0], sizes = [1, 4], strides = [1, 1]} : vector<1x16xf32> to vector<1x4xf32>
    %cst_15 = arith.constant 1.000000e+00 : f32
    %23 = vector.broadcast %cst_15 : f32 to vector<1x4xf32>
    %24 = arith.addf %22, %23 : vector<1x4xf32>
    %cst_16 = arith.constant 5.000000e-01 : f32
    %25 = vector.broadcast %cst_16 : f32 to vector<1x4xf32>
    %26 = arith.mulf %25, %24 : vector<1x4xf32>
    %27 = vector.extract_strided_slice %21 {offsets = [0, 4], sizes = [1, 4], strides = [1, 1]} : vector<1x16xf32> to vector<1x4xf32>
    %cst_17 = arith.constant 1.000000e+00 : f32
    %28 = vector.broadcast %cst_17 : f32 to vector<1x4xf32>
    %29 = arith.addf %27, %28 : vector<1x4xf32>
    %cst_18 = arith.constant 5.000000e-01 : f32
    %30 = vector.broadcast %cst_18 : f32 to vector<1x4xf32>
    %31 = arith.mulf %30, %29 : vector<1x4xf32>
    %32 = vector.extract_strided_slice %21 {offsets = [0, 8], sizes = [1, 4], strides = [1, 1]} : vector<1x16xf32> to vector<1x4xf32>
    %33 = vector.extract_strided_slice %21 {offsets = [0, 12], sizes = [1, 4], strides = [1, 1]} : vector<1x16xf32> to vector<1x4xf32>
    %cst_19 = arith.constant 1.000000e+00 : f32
    %34 = vector.broadcast %cst_19 : f32 to vector<1x4xf32>
    %35 = arith.addf %33, %34 : vector<1x4xf32>
    %cst_20 = arith.constant 5.000000e-01 : f32
    %36 = vector.broadcast %cst_20 : f32 to vector<1x4xf32>
    %37 = arith.mulf %36, %35 : vector<1x4xf32>
    %38 = arith.mulf %31, %17 : vector<1x4xf32>
    %39 = arith.mulf %26, %32 : vector<1x4xf32>
    %40 = arith.addf %38, %39 : vector<1x4xf32>
    %41 = math.tanh %40 : vector<1x4xf32>
    %42 = arith.mulf %37, %41 : vector<1x4xf32>
    %43 = vector.extract_strided_slice %15 {offsets = [1, 0], sizes = [1, 16], strides = [1, 1]} : vector<8x16xf32> to vector<1x16xf32>
    %cst_21 = arith.constant dense<0.000000e+00> : vector<1x16xf32>
    %44 = tpu.matmul %42, %3, %cst_21 {dimension_numbers = #tpu.dot_dimension_numbers<[1], [0], [0], [1], [0, 0, 1, 1], [], []>} : vector<1x4xf32>, vector<4x16xf32>, vector<1x16xf32> -> vector<1x16xf32>
    %45 = arith.addf %43, %44 : vector<1x16xf32>
    %46 = math.tanh %45 : vector<1x16xf32>
    %47 = vector.extract_strided_slice %46 {offsets = [0, 0], sizes = [1, 4], strides = [1, 1]} : vector<1x16xf32> to vector<1x4xf32>
    %cst_22 = arith.constant 1.000000e+00 : f32
    %48 = vector.broadcast %cst_22 : f32 to vector<1x4xf32>
    %49 = arith.addf %47, %48 : vector<1x4xf32>
    %cst_23 = arith.constant 5.000000e-01 : f32
    %50 = vector.broadcast %cst_23 : f32 to vector<1x4xf32>
    %51 = arith.mulf %50, %49 : vector<1x4xf32>
    %52 = vector.extract_strided_slice %46 {offsets = [0, 4], sizes = [1, 4], strides = [1, 1]} : vector<1x16xf32> to vector<1x4xf32>
    %cst_24 = arith.constant 1.000000e+00 : f32
    %53 = vector.broadcast %cst_24 : f32 to vector<1x4xf32>
    %54 = arith.addf %52, %53 : vector<1x4xf32>
    %cst_25 = arith.constant 5.000000e-01 : f32
    %55 = vector.broadcast %cst_25 : f32 to vector<1x4xf32>
    %56 = arith.mulf %55, %54 : vector<1x4xf32>
    %57 = vector.extract_strided_slice %46 {offsets = [0, 8], sizes = [1, 4], strides = [1, 1]} : vector<1x16xf32> to vector<1x4xf32>
    %58 = vector.extract_strided_slice %46 {offsets = [0, 12], sizes = [1, 4], strides = [1, 1]} : vector<1x16xf32> to vector<1x4xf32>
    %cst_26 = arith.constant 1.000000e+00 : f32
    %59 = vector.broadcast %cst_26 : f32 to vector<1x4xf32>
    %60 = arith.addf %58, %59 : vector<1x4xf32>
    %cst_27 = arith.constant 5.000000e-01 : f32
    %61 = vector.broadcast %cst_27 : f32 to vector<1x4xf32>
    %62 = arith.mulf %61, %60 : vector<1x4xf32>
    %63 = arith.mulf %56, %40 : vector<1x4xf32>
    %64 = arith.mulf %51, %57 : vector<1x4xf32>
    %65 = arith.addf %63, %64 : vector<1x4xf32>
    %66 = math.tanh %65 : vector<1x4xf32>
    %67 = arith.mulf %62, %66 : vector<1x4xf32>
    %68 = vector.extract_strided_slice %15 {offsets = [2, 0], sizes = [1, 16], strides = [1, 1]} : vector<8x16xf32> to vector<1x16xf32>
    %cst_28 = arith.constant dense<0.000000e+00> : vector<1x16xf32>
    %69 = tpu.matmul %67, %3, %cst_28 {dimension_numbers = #tpu.dot_dimension_numbers<[1], [0], [0], [1], [0, 0, 1, 1], [], []>} : vector<1x4xf32>, vector<4x16xf32>, vector<1x16xf32> -> vector<1x16xf32>
    %70 = arith.addf %68, %69 : vector<1x16xf32>
    %71 = math.tanh %70 : vector<1x16xf32>
    %72 = vector.extract_strided_slice %71 {offsets = [0, 0], sizes = [1, 4], strides = [1, 1]} : vector<1x16xf32> to vector<1x4xf32>
    %cst_29 = arith.constant 1.000000e+00 : f32
    %73 = vector.broadcast %cst_29 : f32 to vector<1x4xf32>
    %74 = arith.addf %72, %73 : vector<1x4xf32>
    %cst_30 = arith.constant 5.000000e-01 : f32
    %75 = vector.broadcast %cst_30 : f32 to vector<1x4xf32>
    %76 = arith.mulf %75, %74 : vector<1x4xf32>
    %77 = vector.extract_strided_slice %71 {offsets = [0, 4], sizes = [1, 4], strides = [1, 1]} : vector<1x16xf32> to vector<1x4xf32>
    %cst_31 = arith.constant 1.000000e+00 : f32
    %78 = vector.broadcast %cst_31 : f32 to vector<1x4xf32>
    %79 = arith.addf %77, %78 : vector<1x4xf32>
    %cst_32 = arith.constant 5.000000e-01 : f32
    %80 = vector.broadcast %cst_32 : f32 to vector<1x4xf32>
    %81 = arith.mulf %80, %79 : vector<1x4xf32>
    %82 = vector.extract_strided_slice %71 {offsets = [0, 8], sizes = [1, 4], strides = [1, 1]} : vector<1x16xf32> to vector<1x4xf32>
    %83 = vector.extract_strided_slice %71 {offsets = [0, 12], sizes = [1, 4], strides = [1, 1]} : vector<1x16xf32> to vector<1x4xf32>
    %cst_33 = arith.constant 1.000000e+00 : f32
    %84 = vector.broadcast %cst_33 : f32 to vector<1x4xf32>
    %85 = arith.addf %83, %84 : vector<1x4xf32>
    %cst_34 = arith.constant 5.000000e-01 : f32
    %86 = vector.broadcast %cst_34 : f32 to vector<1x4xf32>
    %87 = arith.mulf %86, %85 : vector<1x4xf32>
    %88 = arith.mulf %81, %65 : vector<1x4xf32>
    %89 = arith.mulf %76, %82 : vector<1x4xf32>
    %90 = arith.addf %88, %89 : vector<1x4xf32>
    %91 = math.tanh %90 : vector<1x4xf32>
    %92 = arith.mulf %87, %91 : vector<1x4xf32>
    %93 = vector.extract_strided_slice %15 {offsets = [3, 0], sizes = [1, 16], strides = [1, 1]} : vector<8x16xf32> to vector<1x16xf32>
    %cst_35 = arith.constant dense<0.000000e+00> : vector<1x16xf32>
    %94 = tpu.matmul %92, %3, %cst_35 {dimension_numbers = #tpu.dot_dimension_numbers<[1], [0], [0], [1], [0, 0, 1, 1], [], []>} : vector<1x4xf32>, vector<4x16xf32>, vector<1x16xf32> -> vector<1x16xf32>
    %95 = arith.addf %93, %94 : vector<1x16xf32>
    %96 = math.tanh %95 : vector<1x16xf32>
    %97 = vector.extract_strided_slice %96 {offsets = [0, 0], sizes = [1, 4], strides = [1, 1]} : vector<1x16xf32> to vector<1x4xf32>
    %cst_36 = arith.constant 1.000000e+00 : f32
    %98 = vector.broadcast %cst_36 : f32 to vector<1x4xf32>
    %99 = arith.addf %97, %98 : vector<1x4xf32>
    %cst_37 = arith.constant 5.000000e-01 : f32
    %100 = vector.broadcast %cst_37 : f32 to vector<1x4xf32>
    %101 = arith.mulf %100, %99 : vector<1x4xf32>
    %102 = vector.extract_strided_slice %96 {offsets = [0, 4], sizes = [1, 4], strides = [1, 1]} : vector<1x16xf32> to vector<1x4xf32>
    %cst_38 = arith.constant 1.000000e+00 : f32
    %103 = vector.broadcast %cst_38 : f32 to vector<1x4xf32>
    %104 = arith.addf %102, %103 : vector<1x4xf32>
    %cst_39 = arith.constant 5.000000e-01 : f32
    %105 = vector.broadcast %cst_39 : f32 to vector<1x4xf32>
    %106 = arith.mulf %105, %104 : vector<1x4xf32>
    %107 = vector.extract_strided_slice %96 {offsets = [0, 8], sizes = [1, 4], strides = [1, 1]} : vector<1x16xf32> to vector<1x4xf32>
    %108 = vector.extract_strided_slice %96 {offsets = [0, 12], sizes = [1, 4], strides = [1, 1]} : vector<1x16xf32> to vector<1x4xf32>
    %cst_40 = arith.constant 1.000000e+00 : f32
    %109 = vector.broadcast %cst_40 : f32 to vector<1x4xf32>
    %110 = arith.addf %108, %109 : vector<1x4xf32>
    %cst_41 = arith.constant 5.000000e-01 : f32
    %111 = vector.broadcast %cst_41 : f32 to vector<1x4xf32>
    %112 = arith.mulf %111, %110 : vector<1x4xf32>
    %113 = arith.mulf %106, %90 : vector<1x4xf32>
    %114 = arith.mulf %101, %107 : vector<1x4xf32>
    %115 = arith.addf %113, %114 : vector<1x4xf32>
    %116 = math.tanh %115 : vector<1x4xf32>
    %117 = arith.mulf %112, %116 : vector<1x4xf32>
    %118 = vector.extract_strided_slice %15 {offsets = [4, 0], sizes = [1, 16], strides = [1, 1]} : vector<8x16xf32> to vector<1x16xf32>
    %cst_42 = arith.constant dense<0.000000e+00> : vector<1x16xf32>
    %119 = tpu.matmul %117, %3, %cst_42 {dimension_numbers = #tpu.dot_dimension_numbers<[1], [0], [0], [1], [0, 0, 1, 1], [], []>} : vector<1x4xf32>, vector<4x16xf32>, vector<1x16xf32> -> vector<1x16xf32>
    %120 = arith.addf %118, %119 : vector<1x16xf32>
    %121 = math.tanh %120 : vector<1x16xf32>
    %122 = vector.extract_strided_slice %121 {offsets = [0, 0], sizes = [1, 4], strides = [1, 1]} : vector<1x16xf32> to vector<1x4xf32>
    %cst_43 = arith.constant 1.000000e+00 : f32
    %123 = vector.broadcast %cst_43 : f32 to vector<1x4xf32>
    %124 = arith.addf %122, %123 : vector<1x4xf32>
    %cst_44 = arith.constant 5.000000e-01 : f32
    %125 = vector.broadcast %cst_44 : f32 to vector<1x4xf32>
    %126 = arith.mulf %125, %124 : vector<1x4xf32>
    %127 = vector.extract_strided_slice %121 {offsets = [0, 4], sizes = [1, 4], strides = [1, 1]} : vector<1x16xf32> to vector<1x4xf32>
    %cst_45 = arith.constant 1.000000e+00 : f32
    %128 = vector.broadcast %cst_45 : f32 to vector<1x4xf32>
    %129 = arith.addf %127, %128 : vector<1x4xf32>
    %cst_46 = arith.constant 5.000000e-01 : f32
    %130 = vector.broadcast %cst_46 : f32 to vector<1x4xf32>
    %131 = arith.mulf %130, %129 : vector<1x4xf32>
    %132 = vector.extract_strided_slice %121 {offsets = [0, 8], sizes = [1, 4], strides = [1, 1]} : vector<1x16xf32> to vector<1x4xf32>
    %133 = vector.extract_strided_slice %121 {offsets = [0, 12], sizes = [1, 4], strides = [1, 1]} : vector<1x16xf32> to vector<1x4xf32>
    %cst_47 = arith.constant 1.000000e+00 : f32
    %134 = vector.broadcast %cst_47 : f32 to vector<1x4xf32>
    %135 = arith.addf %133, %134 : vector<1x4xf32>
    %cst_48 = arith.constant 5.000000e-01 : f32
    %136 = vector.broadcast %cst_48 : f32 to vector<1x4xf32>
    %137 = arith.mulf %136, %135 : vector<1x4xf32>
    %138 = arith.mulf %131, %115 : vector<1x4xf32>
    %139 = arith.mulf %126, %132 : vector<1x4xf32>
    %140 = arith.addf %138, %139 : vector<1x4xf32>
    %141 = math.tanh %140 : vector<1x4xf32>
    %142 = arith.mulf %137, %141 : vector<1x4xf32>
    %143 = vector.extract_strided_slice %15 {offsets = [5, 0], sizes = [1, 16], strides = [1, 1]} : vector<8x16xf32> to vector<1x16xf32>
    %cst_49 = arith.constant dense<0.000000e+00> : vector<1x16xf32>
    %144 = tpu.matmul %142, %3, %cst_49 {dimension_numbers = #tpu.dot_dimension_numbers<[1], [0], [0], [1], [0, 0, 1, 1], [], []>} : vector<1x4xf32>, vector<4x16xf32>, vector<1x16xf32> -> vector<1x16xf32>
    %145 = arith.addf %143, %144 : vector<1x16xf32>
    %146 = math.tanh %145 : vector<1x16xf32>
    %147 = vector.extract_strided_slice %146 {offsets = [0, 0], sizes = [1, 4], strides = [1, 1]} : vector<1x16xf32> to vector<1x4xf32>
    %cst_50 = arith.constant 1.000000e+00 : f32
    %148 = vector.broadcast %cst_50 : f32 to vector<1x4xf32>
    %149 = arith.addf %147, %148 : vector<1x4xf32>
    %cst_51 = arith.constant 5.000000e-01 : f32
    %150 = vector.broadcast %cst_51 : f32 to vector<1x4xf32>
    %151 = arith.mulf %150, %149 : vector<1x4xf32>
    %152 = vector.extract_strided_slice %146 {offsets = [0, 4], sizes = [1, 4], strides = [1, 1]} : vector<1x16xf32> to vector<1x4xf32>
    %cst_52 = arith.constant 1.000000e+00 : f32
    %153 = vector.broadcast %cst_52 : f32 to vector<1x4xf32>
    %154 = arith.addf %152, %153 : vector<1x4xf32>
    %cst_53 = arith.constant 5.000000e-01 : f32
    %155 = vector.broadcast %cst_53 : f32 to vector<1x4xf32>
    %156 = arith.mulf %155, %154 : vector<1x4xf32>
    %157 = vector.extract_strided_slice %146 {offsets = [0, 8], sizes = [1, 4], strides = [1, 1]} : vector<1x16xf32> to vector<1x4xf32>
    %158 = vector.extract_strided_slice %146 {offsets = [0, 12], sizes = [1, 4], strides = [1, 1]} : vector<1x16xf32> to vector<1x4xf32>
    %cst_54 = arith.constant 1.000000e+00 : f32
    %159 = vector.broadcast %cst_54 : f32 to vector<1x4xf32>
    %160 = arith.addf %158, %159 : vector<1x4xf32>
    %cst_55 = arith.constant 5.000000e-01 : f32
    %161 = vector.broadcast %cst_55 : f32 to vector<1x4xf32>
    %162 = arith.mulf %161, %160 : vector<1x4xf32>
    %163 = arith.mulf %156, %140 : vector<1x4xf32>
    %164 = arith.mulf %151, %157 : vector<1x4xf32>
    %165 = arith.addf %163, %164 : vector<1x4xf32>
    %166 = math.tanh %165 : vector<1x4xf32>
    %167 = arith.mulf %162, %166 : vector<1x4xf32>
    %168 = vector.extract_strided_slice %15 {offsets = [6, 0], sizes = [1, 16], strides = [1, 1]} : vector<8x16xf32> to vector<1x16xf32>
    %cst_56 = arith.constant dense<0.000000e+00> : vector<1x16xf32>
    %169 = tpu.matmul %167, %3, %cst_56 {dimension_numbers = #tpu.dot_dimension_numbers<[1], [0], [0], [1], [0, 0, 1, 1], [], []>} : vector<1x4xf32>, vector<4x16xf32>, vector<1x16xf32> -> vector<1x16xf32>
    %170 = arith.addf %168, %169 : vector<1x16xf32>
    %171 = math.tanh %170 : vector<1x16xf32>
    %172 = vector.extract_strided_slice %171 {offsets = [0, 0], sizes = [1, 4], strides = [1, 1]} : vector<1x16xf32> to vector<1x4xf32>
    %cst_57 = arith.constant 1.000000e+00 : f32
    %173 = vector.broadcast %cst_57 : f32 to vector<1x4xf32>
    %174 = arith.addf %172, %173 : vector<1x4xf32>
    %cst_58 = arith.constant 5.000000e-01 : f32
    %175 = vector.broadcast %cst_58 : f32 to vector<1x4xf32>
    %176 = arith.mulf %175, %174 : vector<1x4xf32>
    %177 = vector.extract_strided_slice %171 {offsets = [0, 4], sizes = [1, 4], strides = [1, 1]} : vector<1x16xf32> to vector<1x4xf32>
    %cst_59 = arith.constant 1.000000e+00 : f32
    %178 = vector.broadcast %cst_59 : f32 to vector<1x4xf32>
    %179 = arith.addf %177, %178 : vector<1x4xf32>
    %cst_60 = arith.constant 5.000000e-01 : f32
    %180 = vector.broadcast %cst_60 : f32 to vector<1x4xf32>
    %181 = arith.mulf %180, %179 : vector<1x4xf32>
    %182 = vector.extract_strided_slice %171 {offsets = [0, 8], sizes = [1, 4], strides = [1, 1]} : vector<1x16xf32> to vector<1x4xf32>
    %183 = vector.extract_strided_slice %171 {offsets = [0, 12], sizes = [1, 4], strides = [1, 1]} : vector<1x16xf32> to vector<1x4xf32>
    %cst_61 = arith.constant 1.000000e+00 : f32
    %184 = vector.broadcast %cst_61 : f32 to vector<1x4xf32>
    %185 = arith.addf %183, %184 : vector<1x4xf32>
    %cst_62 = arith.constant 5.000000e-01 : f32
    %186 = vector.broadcast %cst_62 : f32 to vector<1x4xf32>
    %187 = arith.mulf %186, %185 : vector<1x4xf32>
    %188 = arith.mulf %181, %165 : vector<1x4xf32>
    %189 = arith.mulf %176, %182 : vector<1x4xf32>
    %190 = arith.addf %188, %189 : vector<1x4xf32>
    %191 = math.tanh %190 : vector<1x4xf32>
    %192 = arith.mulf %187, %191 : vector<1x4xf32>
    %193 = vector.extract_strided_slice %15 {offsets = [7, 0], sizes = [1, 16], strides = [1, 1]} : vector<8x16xf32> to vector<1x16xf32>
    %cst_63 = arith.constant dense<0.000000e+00> : vector<1x16xf32>
    %194 = tpu.matmul %192, %3, %cst_63 {dimension_numbers = #tpu.dot_dimension_numbers<[1], [0], [0], [1], [0, 0, 1, 1], [], []>} : vector<1x4xf32>, vector<4x16xf32>, vector<1x16xf32> -> vector<1x16xf32>
    %195 = arith.addf %193, %194 : vector<1x16xf32>
    %196 = math.tanh %195 : vector<1x16xf32>
    %197 = vector.extract_strided_slice %196 {offsets = [0, 0], sizes = [1, 4], strides = [1, 1]} : vector<1x16xf32> to vector<1x4xf32>
    %cst_64 = arith.constant 1.000000e+00 : f32
    %198 = vector.broadcast %cst_64 : f32 to vector<1x4xf32>
    %199 = arith.addf %197, %198 : vector<1x4xf32>
    %cst_65 = arith.constant 5.000000e-01 : f32
    %200 = vector.broadcast %cst_65 : f32 to vector<1x4xf32>
    %201 = arith.mulf %200, %199 : vector<1x4xf32>
    %202 = vector.extract_strided_slice %196 {offsets = [0, 4], sizes = [1, 4], strides = [1, 1]} : vector<1x16xf32> to vector<1x4xf32>
    %cst_66 = arith.constant 1.000000e+00 : f32
    %203 = vector.broadcast %cst_66 : f32 to vector<1x4xf32>
    %204 = arith.addf %202, %203 : vector<1x4xf32>
    %cst_67 = arith.constant 5.000000e-01 : f32
    %205 = vector.broadcast %cst_67 : f32 to vector<1x4xf32>
    %206 = arith.mulf %205, %204 : vector<1x4xf32>
    %207 = vector.extract_strided_slice %196 {offsets = [0, 8], sizes = [1, 4], strides = [1, 1]} : vector<1x16xf32> to vector<1x4xf32>
    %208 = vector.extract_strided_slice %196 {offsets = [0, 12], sizes = [1, 4], strides = [1, 1]} : vector<1x16xf32> to vector<1x4xf32>
    %cst_68 = arith.constant 1.000000e+00 : f32
    %209 = vector.broadcast %cst_68 : f32 to vector<1x4xf32>
    %210 = arith.addf %208, %209 : vector<1x4xf32>
    %cst_69 = arith.constant 5.000000e-01 : f32
    %211 = vector.broadcast %cst_69 : f32 to vector<1x4xf32>
    %212 = arith.mulf %211, %210 : vector<1x4xf32>
    %213 = arith.mulf %206, %190 : vector<1x4xf32>
    %214 = arith.mulf %201, %207 : vector<1x4xf32>
    %215 = arith.addf %213, %214 : vector<1x4xf32>
    %216 = math.tanh %215 : vector<1x4xf32>
    %217 = arith.mulf %212, %216 : vector<1x4xf32>
    %218 = tpu.concatenate %42, %67, %92, %117, %142, %167, %192, %217 in 0 : vector<1x4xf32>, vector<1x4xf32>, vector<1x4xf32>, vector<1x4xf32>, vector<1x4xf32>, vector<1x4xf32>, vector<1x4xf32>, vector<1x4xf32> -> vector<8x4xf32>
    %cst_70 = arith.constant dense<0.000000e+00> : vector<8x128xf32>
    %219 = tpu.matmul %218, %5, %cst_70 {dimension_numbers = #tpu.dot_dimension_numbers<[1], [0], [0], [1], [0, 0, 1, 1], [], []>} : vector<8x4xf32>, vector<4x128xf32>, vector<8x128xf32> -> vector<8x128xf32>
    %220 = vector.broadcast %6 : vector<1x128xf32> to vector<8x128xf32>
    %221 = arith.addf %219, %220 : vector<8x128xf32>
    %cst_71 = arith.constant dense<0xFF800000> : vector<8xf32>
    %222 = vector.multi_reduction <maximumf>, %221, %cst_71 [1] : vector<8x128xf32> to vector<8xf32>
    %223 = vector.shape_cast %222 : vector<8xf32> to vector<8x1xf32>
    %224 = vector.broadcast %223 : vector<8x1xf32> to vector<8x128xf32>
    %225 = arith.subf %221, %224 : vector<8x128xf32>
    %226 = math.exp %225 : vector<8x128xf32>
    %cst_72 = arith.constant dense<0.000000e+00> : vector<8xf32>
    %227 = vector.multi_reduction <add>, %226, %cst_72 [1] : vector<8x128xf32> to vector<8xf32>
    %228 = vector.shape_cast %227 : vector<8xf32> to vector<8x1xf32>
    %229 = vector.broadcast %228 : vector<8x1xf32> to vector<8x128xf32>
    %230 = arith.divf %226, %229 : vector<8x128xf32>
    %c0_73 = arith.constant 0 : index
    %c0_74 = arith.constant 0 : index
    %231 = vector.load %arg3[%c0_73, %c0_74] : memref<16x128xf32, #tpu.memory_space<vmem>>, vector<8x128xf32>
    tpu.vector_store %arg3[%c0_73, %c0_74], %230 {strides = array<i32>} : memref<16x128xf32, #tpu.memory_space<vmem>>, vector<8x128xf32>,
    %232 = tpu.concatenate %217, %215 in 0 : vector<1x4xf32>, vector<1x4xf32> -> vector<2x4xf32>
    %c8_75 = arith.constant 8 : index
    %c0_76 = arith.constant 0 : index
    %233 = vector.load %arg3[%c8_75, %c0_76] : memref<16x128xf32, #tpu.memory_space<vmem>>, vector<2x4xf32>
    tpu.vector_store %arg3[%c8_75, %c0_76], %232 {strides = array<i32>} : memref<16x128xf32, #tpu.memory_space<vmem>>, vector<2x4xf32>,
    return
  }
}

</mosaic_0001>

<bundles_post_ra>
// kernel: policy_forward.1
= control target key start
LH: loop header
LB: loop body
LE: loop exit
PB: predicated region body
PF: predicated region fallthrough
CT: control target
= control target key end

     0   :  { %8 = vsyncpa [#allocation3], 0  ;;  %s1318_s12 = smov [#allocation2]   ;;  %s1487_s0 = inlined_call_operand.vmem [shape: f32[8,2], index: 0, kind: input, shape index: {}]   ;;  %s1488_s1 = inlined_call_operand.vmem [shape: f32[2,4], index: 1, kind: input, shape index: {}]   ;;  %s1489_s2 = inlined_call_operand.hbm [shape: f32[56,128], index: 2, kind: input, shape index: {}]   ;;  %s1490_s3 = inlined_call_operand.vmem [shape: f32[16,128], index: 3, kind: output, shape index: {}]  }
   0x1   :  { %s18_s13 = sshll.u32 %s1318_s12, 4  ;;  %s1294_s16 = scalar_lea.hbm %s1489_s2, 896  ;;  %s19_s13 = int_to_ptr.vmem [resolvable:$true] %s18_s13 }
   0x2   :  { %p1295_p0 = scmp.ne.s32.totalorder %s1489_s2, %s1294_s16  ;;  %p1298_p1 = scmp.lt.u32.totalorder %s1294_s16, %s1489_s2 }
   0x4   :  { %p1300_p2 = pnand %p1298_p1, %p1295_p0 }
   0x6   :  { %1303 = shalt.err (!%p1300_p2)
}
   0x7   :  { %s1304_s21 = scalar_lea.vmem %s19_s13, 896  ;;  %p1309_p4 = scmp.lt.s32.totalorder %s19_s13, %s19_s13 }
   0x8   :  { %p1305_p3 = scmp.ne.s32.totalorder %s19_s13, %s1304_s21  ;;  %p1310_p5 = scmp.lt.s32.totalorder %s1304_s21, %s1304_s21 }
   0xa   :  { %p1311_p6 = por %p1310_p5, %p1309_p4 }
   0xc   :  { %p1312_p7 = pnand %p1311_p6, %p1305_p3 }
   0xe   :  { %1315 = shalt.err (!%p1312_p7)
}
   0xf   :  { %s1319_s22 = smov 128   ;;  %s1320_s23 = smov 8  }
  0x10   :  { %24 = dma.hbm_to_vmem [thread:$0]  %s1489_s2, 896, %s19_s13, [#allocation3], %s1319_s22, %s1319_s22, %s1320_s23  }
  0x11   :  { %1316 = dma.done.wait [#allocation3], 896  }
  0x12   :  { %1317 = vsyncadd [#allocation3], 4294966400  ;;  %v1321_v0 = vmov 0.0   ;;  %vm1322_vm0 = vmmov 0   ;;  %vm44_vm1 = vcmask 1041408   ;;  %vm40_vm2 = vcmask 15360  }
  0x13   :  { %1195 = vmatprep.subr.mxu0 %v1321_v0  ;;  %1197 = vmatprep.mubr.msk.f32.mxu0 %vm1322_vm0, %v1321_v0  ;;  %v28_v1 = vld [vmem:[#allocation2] sm:$0x3]  ;;  %v1372_v3 = vld [vmem:[#allocation2 + $0x18] sm:$0xf]  ;;  %vm127_vm3 = vcmask 1043456   ;;  %vm123_vm4 = vcmask 31744  }
  0x14   :  { %1200 = vmatprep.subr.mxu1 %v1321_v0  ;;  %1202 = vmatprep.mubr.msk.f32.mxu1 %vm1322_vm0, %v1321_v0  ;;  %v35_v2 = vld [vmem:[%s1487_s0] sm:$0xff]  ;;  %v30_v4 = vld [vmem:[#allocation2 + $0x10] sm:$0xf]  ;;  %v1148_v6 = vld [vmem:[#allocation2 + $0x8] ss:$0 sm:$0xff]  ;;  %s1323_s28 = smov 120  }
  0x15   :  { %1196 = vmatpush3.msk.msra.mxu0 %vm44_vm1, %v28_v1  ;;  %1201 = vmatpush3.msk.msra.mxu1 %vm127_vm3, %v30_v4  ;;  %v201_v5 = vld [vmem:[%s1488_s1] sm:$0x1]  ;;  %v202_v19 = vld [vmem:[%s1488_s1 + $0x1] sm:$0x1]  ;;  %s1324_s4 = smov 4   ;;  %s1325_s1 = smov 116  }
  0x16   :  { %1198 = vmatmul.mubr.msk.f32.vlgmr.msra.gmra.mrb[0].mxu0 %vm40_vm2, %v35_v2  ;;  %1205 = vmatprep.subr.mxu0 %v1321_v0  ;;  %v1151_v13 = vld [vmem:[#allocation2 + $0x20] ss:$0 sm:$0xff]  ;;  %vm1024_vm5 = vcmask 1040384   ;;  %vm1027_vm6 = vcmask 1042432   ;;  %vm1030_vm7 = vcmask 1044480   ;;  %vm1032_vm8 = vcmask 1045504  }
  0x17   :  { %1207 = vmatprep.mubr.msk.f32.mxu0 %vm1322_vm0, %v1321_v0  ;;  %1206 = vmatpush3.msk.msra.mxu0 %vm127_vm3, %v1372_v3  ;;  %vm1034_vm9 = vcmask 1046528   ;;  %vm1141_vm10 = vcmask 25600  }
  0x18   :  { %1210 = vmatprep.subr.mxu1 %v1321_v0  ;;  %1215 = vmatprep.subr.mxu0 %v1321_v0 }
  0x1a   :  { %1208 = vmatmul.mubr.msk.f32.vlgmr.msra.gmra.mrb[2].mxu0 %vm123_vm4, %v201_v5 }
  0x1b   :  { %1216 = vmatpush3.msk.msra.mxu0 %vm127_vm3, %v1372_v3  ;;  %1217 = vmatprep.mubr.msk.f32.mxu0 %vm1322_vm0, %v1321_v0 }
  0x1c   :  { %1225 = vmatprep.subr.mxu0 %v1321_v0 }
  0xe9   :  { %v114_v7 = vpop.f32.mrb[0].mxu0 }
  0xea   :  { %v115_v8 = vadd.f32 %v1148_v6, %v114_v7  ;;  %v1199_v9 = vpop.f32.mrb[1].mxu0 }
  0xec   :  { %v118_v10 = vmax.f32 %v115_v8, 0.0 }
  0xed   :  { %v275_v11 = vpop.f32.mrb[2].mxu0 }
  0xee   :  { %1203 = vmatmul.mubr.msk.f32.vlgmr.msra.gmra.mrb[0].mxu1 %vm123_vm4, %v118_v10  ;;  %v1209_v12 = vpop.f32.mrb[3].mxu0 }
  0xef   :  { %1211 = vmatpush3.msk.msra.mxu1 %vm127_vm3, %v1372_v3  ;;  %1212 = vmatprep.mubr.msk.f32.mxu1 %vm1322_vm0, %v1321_v0 }
  0xf0   :  { %1220 = vmatprep.subr.mxu1 %v1321_v0 }
 0x1c1   :  { %v197_v14 = vpop.f32.mrb[0].mxu1 }
 0x1c2   :  { %v1394_v15 = vadd.f32 %v1151_v13, %v197_v14  ;;  %v1204_v16 = vpop.f32.mrb[1].mxu1 }
 0x1c4   :  { %v279_v17 = vadd.f32 %v275_v11, %v1394_v15 }
 0x1c6   :  { %1258 = vtanh.f32 %v279_v17 }
 0x1d0   :  { %v1259_v18 = vpop.eup %1258 }
 0x1d1   :  { %289 = vrot.lane.b32.xlu0 %v1259_v18, %s1323_s28  ;;  %v281_v20 = vadd.f32 1.0, %v1259_v18 }
 0x1d3   :  { %v282_v21 = vmul.f32 0.5, %v281_v20 }
 0x1d5   :  { %284 = vrot.lane.b32.xlu0 %v202_v19, %s1324_s4 }
 0x243   :  { %v290_v22 = vpop.permute.xlu0 %289 }
 0x244   :  { %v292_v23 = vmul.f32 %v290_v22, %v282_v21 }
 0x246   :  { %294 = vrot.lane.b32.xlu1 %v292_v23, %s1324_s4 }
 0x247   :  { %v285_v24 = vpop.permute.xlu0 %284 }
 0x248   :  { %v287_v25 = vmul.f32 %v285_v24, %v282_v21 }
 0x2b8   :  { %v295_v26 = vpop.permute.xlu1 %294 }
 0x2b9   :  { %v297_v27 = vadd.f32 %v295_v26, %v287_v25 }
 0x2bb   :  { %1260 = vtanh.f32 %v297_v27  ;;  %v387_v41 = vrot.slane %v297_v27, 7 }
 0x2c5   :  { %v1261_v28 = vpop.eup %1260 }
 0x2c6   :  { %300 = vrot.lane.b32.xlu1 %v1261_v28, %s1320_s23 }
 0x338   :  { %v301_v29 = vpop.permute.xlu1 %300 }
 0x339   :  { %v303_v30 = vmul.f32 %v301_v29, %v282_v21 }
 0x33b   :  { %305 = vrot.lane.b32.xlu0 %v303_v30, %s1325_s1 }
 0x3ad   :  { %v306_v31 = vpop.permute.xlu0 %305 }
 0x3ae   :  { %1213 = vmatmul.mubr.msk.f32.vlgmr.msra.gmra.mrb[2].mxu1 %vm123_vm4, %v306_v31 }
 0x3af   :  { %1221 = vmatpush3.msk.msra.mxu1 %vm127_vm3, %v1372_v3  ;;  %1222 = vmatprep.mubr.msk.f32.mxu1 %vm1322_vm0, %v1321_v0 }
 0x3b0   :  { %1230 = vmatprep.subr.mxu1 %v1321_v0 }
 0x481   :  { %v375_v32 = vpop.f32.mrb[2].mxu1 }
 0x482   :  { %v380_v33 = vrot.slane %v375_v32, 7  ;;  %v1214_v34 = vpop.f32.mrb[3].mxu1 }
 0x484   :  { %v382_v35 = vadd.f32 %v380_v33, %v1394_v15 }
 0x486   :  { %1262 = vtanh.f32 %v382_v35 }
 0x490   :  { %v1263_v36 = vpop.eup %1262 }
 0x491   :  { %391 = vrot.lane.b32.xlu1 %v1263_v36, %s1323_s28  ;;  %v384_v37 = vadd.f32 1.0, %v1263_v36 }
 0x493   :  { %v385_v38 = vmul.f32 0.5, %v384_v37 }
 0x495   :  { %v389_v42 = vmul.f32 %v387_v41, %v385_v38 }
 0x503   :  { %v392_v39 = vpop.permute.xlu1 %391 }
 0x504   :  { %v394_v40 = vmul.f32 %v392_v39, %v385_v38 }
 0x506   :  { %396 = vrot.lane.b32.xlu0 %v394_v40, %s1324_s4 }
 0x578   :  { %v397_v43 = vpop.permute.xlu0 %396 }
 0x579   :  { %v399_v44 = vadd.f32 %v397_v43, %v389_v42 }
 0x57b   :  { %1264 = vtanh.f32 %v399_v44  ;;  %v490_v59 = vrot.slane %v399_v44, 7 }
 0x585   :  { %v1265_v45 = vpop.eup %1264 }
 0x586   :  { %402 = vrot.lane.b32.xlu1 %v1265_v45, %s1320_s23 }
 0x5f8   :  { %v403_v46 = vpop.permute.xlu1 %402 }
 0x5f9   :  { %v405_v47 = vmul.f32 %v403_v46, %v385_v38 }
 0x5fb   :  { %v407_v48 = vrot.slane %v405_v47, 1  ;;  %v1025_v4 = vsel %vm1024_vm5, %v303_v30, %v405_v47 }
 0x5fd   :  { %408 = vrot.lane.b32.xlu0 %v407_v48, %s1325_s1 }
 0x66f   :  { %v409_v49 = vpop.permute.xlu0 %408 }
 0x670   :  { %1218 = vmatmul.mubr.msk.f32.vlgmr.msra.gmra.mrb[4].mxu0 %vm123_vm4, %v409_v49 }
 0x671   :  { %1226 = vmatpush3.msk.msra.mxu0 %vm127_vm3, %v1372_v3  ;;  %1227 = vmatprep.mubr.msk.f32.mxu0 %vm1322_vm0, %v1321_v0 }
 0x672   :  { %1235 = vmatprep.subr.mxu0 %v1321_v0 }
 0x743   :  { %v478_v50 = vpop.f32.mrb[4].mxu0 }
 0x744   :  { %v483_v51 = vrot.slane %v478_v50, 6  ;;  %v1219_v52 = vpop.f32.mrb[5].mxu0 }
 0x746   :  { %v485_v53 = vadd.f32 %v483_v51, %v1394_v15 }
 0x748   :  { %1266 = vtanh.f32 %v485_v53 }
 0x752   :  { %v1267_v54 = vpop.eup %1266 }
 0x753   :  { %494 = vrot.lane.b32.xlu1 %v1267_v54, %s1323_s28  ;;  %v487_v55 = vadd.f32 1.0, %v1267_v54 }
 0x755   :  { %v488_v56 = vmul.f32 0.5, %v487_v55 }
 0x757   :  { %v492_v60 = vmul.f32 %v490_v59, %v488_v56 }
 0x7c5   :  { %v495_v57 = vpop.permute.xlu1 %494 }
 0x7c6   :  { %v497_v58 = vmul.f32 %v495_v57, %v488_v56 }
 0x7c8   :  { %499 = vrot.lane.b32.xlu0 %v497_v58, %s1324_s4 }
 0x83a   :  { %v500_v61 = vpop.permute.xlu0 %499 }
 0x83b   :  { %v502_v62 = vadd.f32 %v500_v61, %v492_v60 }
 0x83d   :  { %1268 = vtanh.f32 %v502_v62  ;;  %v593_v18 = vrot.slane %v502_v62, 7 }
 0x847   :  { %v1269_v63 = vpop.eup %1268 }
 0x848   :  { %505 = vrot.lane.b32.xlu1 %v1269_v63, %s1320_s23 }
 0x8ba   :  { %v506_v1 = vpop.permute.xlu1 %505 }
 0x8bb   :  { %v508_v2 = vmul.f32 %v506_v1, %v488_v56 }
 0x8bd   :  { %v510_v5 = vrot.slane %v508_v2, 2  ;;  %v1026_v6 = vsel %vm44_vm1, %v1025_v4, %v508_v2 }
 0x8bf   :  { %511 = vrot.lane.b32.xlu0 %v510_v5, %s1325_s1 }
 0x931   :  { %v512_v7 = vpop.permute.xlu0 %511 }
 0x932   :  { %1223 = vmatmul.mubr.msk.f32.vlgmr.msra.gmra.mrb[4].mxu1 %vm123_vm4, %v512_v7 }
 0x933   :  { %1231 = vmatpush3.msk.msra.mxu1 %vm127_vm3, %v1372_v3  ;;  %1232 = vmatprep.mubr.msk.f32.mxu1 %vm1322_vm0, %v1321_v0 }
 0x934   :  { %1240 = vmatprep.subr.mxu1 %v1321_v0 }
 0xa05   :  { %v581_v8 = vpop.f32.mrb[4].mxu1 }
 0xa06   :  { %v586_v9 = vrot.slane %v581_v8, 5  ;;  %v1224_v10 = vpop.f32.mrb[5].mxu1 }
 0xa08   :  { %v588_v11 = vadd.f32 %v586_v9, %v1394_v15 }
 0xa0a   :  { %1270 = vtanh.f32 %v588_v11 }
 0xa14   :  { %v1271_v12 = vpop.eup %1270 }
 0xa15   :  { %597 = vrot.lane.b32.xlu1 %v1271_v12, %s1323_s28  ;;  %v590_v13 = vadd.f32 1.0, %v1271_v12 }
 0xa17   :  { %v591_v14 = vmul.f32 0.5, %v590_v13 }
 0xa19   :  { %v595_v19 = vmul.f32 %v593_v18, %v591_v14 }
 0xa87   :  { %v598_v16 = vpop.permute.xlu1 %597 }
 0xa88   :  { %v600_v17 = vmul.f32 %v598_v16, %v591_v14 }
 0xa8a   :  { %602 = vrot.lane.b32.xlu0 %v600_v17, %s1324_s4 }
 0xafc   :  { %v603_v20 = vpop.permute.xlu0 %602 }
 0xafd   :  { %v605_v21 = vadd.f32 %v603_v20, %v595_v19 }
 0xaff   :  { %1272 = vtanh.f32 %v605_v21  ;;  %v696_v37 = vrot.slane %v605_v21, 7 }
 0xb09   :  { %v1273_v22 = vpop.eup %1272 }
 0xb0a   :  { %608 = vrot.lane.b32.xlu1 %v1273_v22, %s1320_s23 }
 0xb7c   :  { %v609_v23 = vpop.permute.xlu1 %608 }
 0xb7d   :  { %v611_v24 = vmul.f32 %v609_v23, %v591_v14 }
 0xb7f   :  { %v613_v25 = vrot.slane %v611_v24, 3  ;;  %v1028_v26 = vsel %vm1027_vm6, %v1026_v6, %v611_v24 }
 0xb81   :  { %614 = vrot.lane.b32.xlu0 %v613_v25, %s1325_s1 }
 0xbf3   :  { %v615_v27 = vpop.permute.xlu0 %614 }
 0xbf4   :  { %1228 = vmatmul.mubr.msk.f32.vlgmr.msra.gmra.mrb[6].mxu0 %vm123_vm4, %v615_v27 }
 0xbf5   :  { %1236 = vmatpush3.msk.msra.mxu0 %vm127_vm3, %v1372_v3  ;;  %1237 = vmatprep.mubr.msk.f32.mxu0 %vm1322_vm0, %v1321_v0 }
 0xbf6   :  { %1245 = vmatprep.subr.mxu0 %v1321_v0 }
 0xcc7   :  { %v684_v28 = vpop.f32.mrb[6].mxu0 }
 0xcc8   :  { %v689_v29 = vrot.slane %v684_v28, 4  ;;  %v1229_v30 = vpop.f32.mrb[7].mxu0 }
 0xcca   :  { %v691_v31 = vadd.f32 %v689_v29, %v1394_v15 }
 0xccc   :  { %1274 = vtanh.f32 %v691_v31 }
 0xcd6   :  { %v1275_v32 = vpop.eup %1274 }
 0xcd7   :  { %700 = vrot.lane.b32.xlu1 %v1275_v32, %s1323_s28  ;;  %v693_v33 = vadd.f32 1.0, %v1275_v32 }
 0xcd9   :  { %v694_v34 = vmul.f32 0.5, %v693_v33 }
 0xcdb   :  { %v698_v38 = vmul.f32 %v696_v37, %v694_v34 }
 0xd49   :  { %v701_v35 = vpop.permute.xlu1 %700 }
 0xd4a   :  { %v703_v36 = vmul.f32 %v701_v35, %v694_v34  ;;  %v33_v35 = vld [vmem:[#allocation2 + $0x28] sm:$0xf] }
 0xd4c   :  { %705 = vrot.lane.b32.xlu0 %v703_v36, %s1324_s4 }
 0xdbe   :  { %v706_v39 = vpop.permute.xlu0 %705 }
 0xdbf   :  { %v708_v40 = vadd.f32 %v706_v39, %v698_v38 }
 0xdc1   :  { %1276 = vtanh.f32 %v708_v40  ;;  %v799_v56 = vrot.slane %v708_v40, 7 }
 0xdcb   :  { %v1277_v41 = vpop.eup %1276 }
 0xdcc   :  { %711 = vrot.lane.b32.xlu1 %v1277_v41, %s1320_s23  ;;  %v1170_v41 = vld [vmem:[#allocation2 + $0x30] ss:$0 sm:$0xff] }
 0xe3e   :  { %v712_v42 = vpop.permute.xlu1 %711 }
 0xe3f   :  { %v714_v43 = vmul.f32 %v712_v42, %v694_v34 }
 0xe41   :  { %v716_v44 = vrot.slane %v714_v43, 4  ;;  %v1029_v45 = vsel %vm127_vm3, %v1028_v26, %v714_v43 }
 0xe43   :  { %717 = vrot.lane.b32.xlu0 %v716_v44, %s1325_s1 }
 0xeb5   :  { %v718_v46 = vpop.permute.xlu0 %717 }
 0xeb6   :  { %1233 = vmatmul.mubr.msk.f32.vlgmr.msra.gmra.mrb[6].mxu1 %vm123_vm4, %v718_v46 }
 0xeb7   :  { %1241 = vmatpush3.msk.msra.mxu1 %vm127_vm3, %v1372_v3  ;;  %1242 = vmatprep.mubr.msk.f32.mxu1 %vm1322_vm0, %v1321_v0 }
 0xf89   :  { %v787_v47 = vpop.f32.mrb[6].mxu1 }
 0xf8a   :  { %v792_v48 = vrot.slane %v787_v47, 3  ;;  %v1234_v49 = vpop.f32.mrb[7].mxu1 }
 0xf8c   :  { %v794_v50 = vadd.f32 %v792_v48, %v1394_v15 }
 0xf8e   :  { %1278 = vtanh.f32 %v794_v50 }
 0xf98   :  { %v1279_v51 = vpop.eup %1278 }
 0xf99   :  { %803 = vrot.lane.b32.xlu1 %v1279_v51, %s1323_s28  ;;  %v796_v52 = vadd.f32 1.0, %v1279_v51 }
 0xf9b   :  { %v797_v53 = vmul.f32 0.5, %v796_v52 }
 0xf9d   :  { %v801_v3 = vmul.f32 %v799_v56, %v797_v53 }
0x100b   :  { %v804_v54 = vpop.permute.xlu1 %803 }
0x100c   :  { %v806_v55 = vmul.f32 %v804_v54, %v797_v53 }
0x100e   :  { %808 = vrot.lane.b32.xlu0 %v806_v55, %s1324_s4 }
0x1080   :  { %v809_v57 = vpop.permute.xlu0 %808 }
0x1081   :  { %v811_v58 = vadd.f32 %v809_v57, %v801_v3 }
0x1083   :  { %1280 = vtanh.f32 %v811_v58  ;;  %v902_v12 = vrot.slane %v811_v58, 7 }
0x108d   :  { %v1281_v59 = vpop.eup %1280 }
0x108e   :  { %814 = vrot.lane.b32.xlu1 %v1281_v59, %s1320_s23 }
0x1100   :  { %v815_v60 = vpop.permute.xlu1 %814 }
0x1101   :  { %v817_v61 = vmul.f32 %v815_v60, %v797_v53 }
0x1103   :  { %v819_v62 = vrot.slane %v817_v61, 5  ;;  %v1031_v63 = vsel %vm1030_vm7, %v1029_v45, %v817_v61 }
0x1105   :  { %820 = vrot.lane.b32.xlu0 %v819_v62, %s1325_s1 }
0x1177   :  { %v821_v1 = vpop.permute.xlu0 %820 }
0x1178   :  { %1238 = vmatmul.mubr.msk.f32.vlgmr.msra.gmra.mrb[8].mxu0 %vm123_vm4, %v821_v1 }
0x1179   :  { %1247 = vmatprep.mubr.msk.f32.mxu0 %vm1322_vm0, %v1321_v0  ;;  %1246 = vmatpush3.msk.msra.mxu0 %vm127_vm3, %v33_v35 }
0x124b   :  { %v890_v2 = vpop.f32.mrb[8].mxu0 }
0x124c   :  { %v895_v4 = vrot.slane %v890_v2, 2  ;;  %v1239_v5 = vpop.f32.mrb[9].mxu0 }
0x124e   :  { %v897_v6 = vadd.f32 %v895_v4, %v1394_v15 }
0x1250   :  { %1282 = vtanh.f32 %v897_v6 }
0x125a   :  { %v1283_v7 = vpop.eup %1282 }
0x125b   :  { %906 = vrot.lane.b32.xlu1 %v1283_v7, %s1323_s28  ;;  %v899_v8 = vadd.f32 1.0, %v1283_v7 }
0x125d   :  { %v900_v9 = vmul.f32 0.5, %v899_v8 }
0x125f   :  { %v904_v13 = vmul.f32 %v902_v12, %v900_v9 }
0x12cd   :  { %v907_v10 = vpop.permute.xlu1 %906 }
0x12ce   :  { %v909_v11 = vmul.f32 %v907_v10, %v900_v9 }
0x12d0   :  { %911 = vrot.lane.b32.xlu0 %v909_v11, %s1324_s4 }
0x1342   :  { %v912_v14 = vpop.permute.xlu0 %911 }
0x1343   :  { %v914_v16 = vadd.f32 %v912_v14, %v904_v13 }
0x1345   :  { %1284 = vtanh.f32 %v914_v16  ;;  %v1005_v31 = vrot.slane %v914_v16, 7 }
0x134f   :  { %v1285_v0 = vpop.eup %1284 }
0x1350   :  { %917 = vrot.lane.b32.xlu1 %v1285_v0, %s1320_s23 }
0x13c2   :  { %v918_v17 = vpop.permute.xlu1 %917 }
0x13c3   :  { %v920_v18 = vmul.f32 %v918_v17, %v900_v9 }
0x13c5   :  { %v922_v19 = vrot.slane %v920_v18, 6  ;;  %v1033_v20 = vsel %vm1032_vm8, %v1031_v63, %v920_v18 }
0x13c7   :  { %923 = vrot.lane.b32.xlu0 %v922_v19, %s1325_s1 }
0x1439   :  { %v924_v21 = vpop.permute.xlu0 %923 }
0x143a   :  { %1243 = vmatmul.mubr.msk.f32.vlgmr.msra.gmra.mrb[8].mxu1 %vm123_vm4, %v924_v21 }
0x150d   :  { %v993_v22 = vpop.f32.mrb[8].mxu1 }
0x150e   :  { %v998_v23 = vrot.slane %v993_v22, 1  ;;  %v1244_v24 = vpop.f32.mrb[9].mxu1 }
0x1510   :  { %v1000_v25 = vadd.f32 %v998_v23, %v1394_v15 }
0x1512   :  { %1286 = vtanh.f32 %v1000_v25 }
0x151c   :  { %v1287_v26 = vpop.eup %1286 }
0x151d   :  { %1009 = vrot.lane.b32.xlu1 %v1287_v26, %s1323_s28  ;;  %v1002_v27 = vadd.f32 1.0, %v1287_v26 }
0x151f   :  { %v1003_v28 = vmul.f32 0.5, %v1002_v27 }
0x1521   :  { %v1007_v32 = vmul.f32 %v1005_v31, %v1003_v28 }
0x158f   :  { %v1010_v29 = vpop.permute.xlu1 %1009 }
0x1590   :  { %v1012_v30 = vmul.f32 %v1010_v29, %v1003_v28 }
0x1592   :  { %1014 = vrot.lane.b32.xlu0 %v1012_v30, %s1324_s4 }
0x1604   :  { %v1015_v33 = vpop.permute.xlu0 %1014 }
0x1605   :  { %v1017_v34 = vadd.f32 %v1015_v33, %v1007_v32 }
0x1607   :  { %1288 = vtanh.f32 %v1017_v34  ;;  %v1132_v39 = vrot.slane %v1017_v34, 6 }
0x1611   :  { %v1289_v36 = vpop.eup %1288 }
0x1612   :  { %1020 = vrot.lane.b32.xlu1 %v1289_v36, %s1320_s23 }
0x1684   :  { %v1021_v15 = vpop.permute.xlu1 %1020 }
0x1685   :  { %v1023_v37 = vmul.f32 %v1021_v15, %v1003_v28 }
0x1687   :  { %v1035_v38 = vsel %vm1034_vm9, %v1033_v20, %v1023_v37  ;;  %v1129_v46 = vrot.slane %v1023_v37, 7 }
0x1688   :  { %1041 = vrot.lane.b32.xlu0 %v1035_v38, %s1325_s1 }
0x168c   :  { %1133 = vrot.lane.b32.xlu0 %v1132_v39, %s1320_s23 }
0x16fa   :  { %v1042_v40 = vpop.permute.xlu0 %1041 }
0x16fb   :  { %1248 = vmatmul.mubr.msk.f32.vlgmr.msra.gmra.mrb[10].mxu0 %vm123_vm4, %v1042_v40 }
0x16fe   :  { %v1134_v45 = vpop.permute.xlu0 %1133 }
0x16ff   :  { %v1136_v47 = vsel %vm1024_vm5, %v1129_v46, %v1134_v45 }
0x17ce   :  { %v1114_v42 = vpop.f32.mrb[10].mxu0 }
0x17cf   :  { %v1115_v43 = vadd.f32 %v1170_v41, %v1114_v42  ;;  %v1249_v44 = vpop.f32.mrb[11].mxu0 }
0x17d1   :  { %1118 = vmax.xlane.f32.xlu1 %v1115_v43 }
0x17e2   :  { %1138 = vrot.lane.b32.xlu1 %v1136_v47, %s1325_s1 }
0x185e   :  { %v1119_v48 = vpop.xlane.xlu1 %1118 }
0x185f   :  { %v1120_v49 = vsub.f32 %v1115_v43, %v1119_v48 }
0x1861   :  { %v1121_v50 = vmul.f32 1.442695, %v1120_v49 }
0x1862   :  { %v1139_v51 = vpop.permute.xlu1 %1138 }
0x1863   :  { %1290 = vpow2.f32 %v1121_v50  ;;  %1142 = vst.msk [vmem:[%s1490_s3 + $0x8] sm:$0x3] %vm1141_vm10, %v1139_v51 }
0x186d   :  { %v1291_v52 = vpop.eup %1290 }
0x186e   :  { %1123 = vadd.xlane.f32.xlu0 %v1291_v52 }
0x18fb   :  { %v1124_v53 = vpop.xlane.xlu0 %1123 }
0x18fc   :  { %1292 = vrcp.f32 %v1124_v53 }
0x1906   :  { %v1293_v54 = vpop.eup %1292 }
0x1907   :  { %v1126_v55 = vmul.f32 %v1293_v54, %v1291_v52 }
0x1909   :  { %1127 = vst [vmem:[%s1490_s3] sm:$0xff] %v1126_v55 }
0x190a   :  { %1147 = vsyncpa [#allocation3], 1 }

</bundles_post_ra>
